<compile_context>
chip_gen: v7x
topology: tpu7x:2x2x1
jax: 0.10.0
libtpu: 0.0.40
codegen_flags: <defaults>
</compile_context>

<pallas_src>
import jax
import jax.numpy as jnp
from jax.experimental import pallas as pl
from jax.experimental.pallas import tpu as pltpu

LEAKY_SLOPE = 0.01  # nn.LeakyReLU default negative_slope
F_IN = 2
F_OUT = 2


def linnet_kernel(w_ref, b_ref, x_ref, o_ref):
    # w_ref: (F_IN, F_OUT) f32 in SMEM, b_ref: (F_OUT,) f32 in SMEM
    # x_ref: (F_IN, TILE_N) f32 in VMEM, o_ref: (F_OUT, TILE_N) f32 in VMEM
    x = x_ref[...]                      # (2, TILE_N)
    x0 = x[0:1, :]                      # (1, TILE_N)
    x1 = x[1:2, :]                      # (1, TILE_N)

    # y[j, :] = w[0, j] * x0 + w[1, j] * x1 + b[j]   -- pure VPU FMAs, scalars
    # broadcast from SMEM/sregs (no MXU, no weight DMA).
    y0 = x0 * w_ref[0, 0] + x1 * w_ref[1, 0] + b_ref[0]
    y1 = x0 * w_ref[0, 1] + x1 * w_ref[1, 1] + b_ref[1]
    y = jnp.concatenate([y0, y1], axis=0)            # (2, TILE_N)

    # LeakyReLU (slope in (0,1)):  max(y, slope*y)
    o_ref[...] = jnp.maximum(y, LEAKY_SLOPE * y).astype(o_ref.dtype)


def linnet_forward(x, w_t, b, *, tile_n=128):
    """x: (N, 2) f32 (PyTorch layout), w_t: (2, 2) f32 stored as (in, out), b: (2,) f32.

    Returns (N, 2) f32, matching LinNet.forward semantics.
    TILE_N=128 keeps VMEM usage tiny (well under v7x's 64 MiB); raise it for
    large N to approach the HBM roofline.
    """
    n, f_in = x.shape
    f_out = w_t.shape[1]
    assert f_in == F_IN and f_out == F_OUT

    # Layout plumbing: batch -> lane axis, padded to a multiple of tile_n.
    n_tiles = pl.cdiv(n, tile_n)
    n_pad = n_tiles * tile_n
    x_t = jnp.pad(x.T, ((0, 0), (0, n_pad - n)))     # (F_IN, n_pad)

    out_t = pl.pallas_call(
        linnet_kernel,
        out_shape=jax.ShapeDtypeStruct((f_out, n_pad), x.dtype),
        grid=(n_tiles,),
        in_specs=[
            # 2x2 weight + 2-wide bias live in SMEM; read as scalars in-kernel.
            pl.BlockSpec(memory_space=pltpu.MemorySpace.SMEM),
            pl.BlockSpec(memory_space=pltpu.MemorySpace.SMEM),
            # x tiled along the lane axis; F_IN dim is the full extent (=2).
            pl.BlockSpec((f_in, tile_n), lambda i: (0, i)),
        ],
        out_specs=pl.BlockSpec((f_out, tile_n), lambda i: (0, i)),
        compiler_params=pltpu.CompilerParams(
            dimension_semantics=("parallel",),
        ),
    )(w_t, b, x_t)

    return out_t[:, :n].T                            # back to (N, 2)


def reference_forward(x, w_t, b):
    y = x @ w_t + b
    return jnp.where(y >= 0, y, LEAKY_SLOPE * y)


if __name__ == "__main__":
    key = jax.random.PRNGKey(0)
    kx, kw, kb = jax.random.split(key, 3)

    # Deterministic parameters (shapes from nn.Linear(2, 2, bias=True)).
    # PyTorch stores weight as (out, in); we keep the transposed (in, out) layout.
    w_t = jax.random.uniform(kw, (F_IN, F_OUT), jnp.float32, minval=-1.0, maxval=1.0)
    b = jax.random.uniform(kb, (F_OUT,), jnp.float32, minval=-1.0, maxval=1.0)

    # Small batch; non-multiple of the 128-wide lane tile to exercise padding
    # and a multi-step grid (3 tiles).
    n = 300
    x = jax.random.normal(kx, (n, F_IN), jnp.float32)

    out = linnet_forward(x, w_t, b)
    out = jax.block_until_ready(out)

    ref = reference_forward(x, w_t, b)
    assert out.shape == (n, F_OUT)
    assert jnp.allclose(out, ref, atol=1e-5, rtol=1e-5)

    print("KERNEL_OK")
</pallas_src>

<mosaic_0001>
module attributes {stable_mosaic.version = 11 : i64} {
  func.func @linnet_kernel(%arg0: i32, %arg1: memref<2x2xf32, #tpu.memory_space<smem>>, %arg2: memref<2xf32, #tpu.memory_space<smem>>, %arg3: memref<2x128xf32, #tpu.memory_space<vmem>>, %arg4: memref<2x128xf32, #tpu.memory_space<vmem>>) attributes {dimension_semantics = [#tpu.dimension_semantics<parallel>], iteration_bounds = array<i64: 3>, scalar_prefetch = 0 : i64, scratch_operands = 0 : i64, tpu.core_type = #tpu.core_type<tc>, window_params = [{transform_indices = @transform_0, window_bounds = array<i64: 2, 2>}, {transform_indices = @transform_1, window_bounds = array<i64: 2>}, {transform_indices = @transform_2, window_bounds = array<i64: 2, 128>}, {transform_indices = @transform_3, window_bounds = array<i64: 2, 128>}]} {
    %c0 = arith.constant 0 : index
    %c0_0 = arith.constant 0 : index
    %0 = vector.load %arg3[%c0, %c0_0] : memref<2x128xf32, #tpu.memory_space<vmem>>, vector<2x128xf32>
    %1 = vector.extract_strided_slice %0 {offsets = [0, 0], sizes = [1, 128], strides = [1, 1]} : vector<2x128xf32> to vector<1x128xf32>
    %2 = vector.extract_strided_slice %0 {offsets = [1, 0], sizes = [1, 128], strides = [1, 1]} : vector<2x128xf32> to vector<1x128xf32>
    %c0_1 = arith.constant 0 : index
    %c0_2 = arith.constant 0 : index
    %3 = memref.load %arg1[%c0_1, %c0_2] : memref<2x2xf32, #tpu.memory_space<smem>>
    %4 = vector.broadcast %3 : f32 to vector<1x128xf32>
    %5 = arith.mulf %1, %4 : vector<1x128xf32>
    %c1 = arith.constant 1 : index
    %c0_3 = arith.constant 0 : index
    %6 = memref.load %arg1[%c1, %c0_3] : memref<2x2xf32, #tpu.memory_space<smem>>
    %7 = vector.broadcast %6 : f32 to vector<1x128xf32>
    %8 = arith.mulf %2, %7 : vector<1x128xf32>
    %9 = arith.addf %5, %8 : vector<1x128xf32>
    %c0_4 = arith.constant 0 : index
    %10 = memref.load %arg2[%c0_4] : memref<2xf32, #tpu.memory_space<smem>>
    %11 = vector.broadcast %10 : f32 to vector<1x128xf32>
    %12 = arith.addf %9, %11 : vector<1x128xf32>
    %c0_5 = arith.constant 0 : index
    %c1_6 = arith.constant 1 : index
    %13 = memref.load %arg1[%c0_5, %c1_6] : memref<2x2xf32, #tpu.memory_space<smem>>
    %14 = vector.broadcast %13 : f32 to vector<1x128xf32>
    %15 = arith.mulf %1, %14 : vector<1x128xf32>
    %c1_7 = arith.constant 1 : index
    %c1_8 = arith.constant 1 : index
    %16 = memref.load %arg1[%c1_7, %c1_8] : memref<2x2xf32, #tpu.memory_space<smem>>
    %17 = vector.broadcast %16 : f32 to vector<1x128xf32>
    %18 = arith.mulf %2, %17 : vector<1x128xf32>
    %19 = arith.addf %15, %18 : vector<1x128xf32>
    %c1_9 = arith.constant 1 : index
    %20 = memref.load %arg2[%c1_9] : memref<2xf32, #tpu.memory_space<smem>>
    %21 = vector.broadcast %20 : f32 to vector<1x128xf32>
    %22 = arith.addf %19, %21 : vector<1x128xf32>
    %23 = tpu.concatenate %12, %22 in 0 : vector<1x128xf32>, vector<1x128xf32> -> vector<2x128xf32>
    %cst = arith.constant 0.00999999977 : f32
    %24 = vector.broadcast %cst : f32 to vector<2x128xf32>
    %25 = arith.mulf %24, %23 : vector<2x128xf32>
    %26 = arith.maximumf %23, %25 : vector<2x128xf32>
    %c0_10 = arith.constant 0 : index
    %c0_11 = arith.constant 0 : index
    %27 = vector.load %arg4[%c0_10, %c0_11] : memref<2x128xf32, #tpu.memory_space<vmem>>, vector<2x128xf32>
    tpu.vector_store %arg4[%c0_10, %c0_11], %26 {strides = array<i32>} : memref<2x128xf32, #tpu.memory_space<vmem>>, vector<2x128xf32>,
    return
  }
  func.func @transform_0(%arg0: i32) -> (i32, i32) {
    %c0_i32 = arith.constant 0 : i32
    %c0_i32_0 = arith.constant 0 : i32
    %c0_i32_1 = arith.constant 0 : i32
    return %c0_i32, %c0_i32_0 : i32, i32
  }
  func.func @transform_1(%arg0: i32) -> i32 {
    %c0_i32 = arith.constant 0 : i32
    %c0_i32_0 = arith.constant 0 : i32
    return %c0_i32 : i32
  }
  func.func @transform_2(%arg0: i32) -> (i32, i32) {
    %c0_i32 = arith.constant 0 : i32
    %c0_i32_0 = arith.constant 0 : i32
    return %c0_i32, %arg0 : i32, i32
  }
  func.func @transform_3(%arg0: i32) -> (i32, i32) {
    %c0_i32 = arith.constant 0 : i32
    %c0_i32_0 = arith.constant 0 : i32
    return %c0_i32, %arg0 : i32, i32
  }
}

</mosaic_0001>

<bundles_post_ra>
// kernel: tpu_custom_call.1
= control target key start
LH: loop header
LB: loop body
LE: loop exit
PB: predicated region body
PF: predicated region fallthrough
CT: control target
= control target key end

     0   :  { %8 = vsyncpa [#allocation4], 0  ;;  %s668_s0 = inlined_call_operand.hbm [shape: f32[2,2], index: 0, kind: input, shape index: {}]   ;;  %s669_s1 = inlined_call_operand.vmem [shape: f32[2], index: 1, kind: input, shape index: {}]   ;;  %s670_s2 = inlined_call_operand.vmem [shape: f32[2,384], index: 2, kind: input, shape index: {}]   ;;  %s671_s3 = inlined_call_operand.hbm [shape: f32[2,384], index: 3, kind: output, shape index: {}]  }
   0x1   :  { %9 = vsyncpa [#allocation5], 0 }
   0x2   :  { %10 = vsyncpa [#allocation3], 0 }
   0x3   :  { %12 = vsyncpa [#allocation3 + $0x1], 0  ;;  %s524_s12 = smov 0   ;;  %s526_s13 = smov 0  }
   0x4   :  { %s528_s14 = smov 0   ;;  %s530_s15 = smov 0  }
   0x5 LB: > { %s545_s16 = sadd.s32 4294967295, %s499_s15   ;;  %s323_s17 = sadd.s32 4294967294, %s499_s15   ;;  %s499_s15 = sphi %s530_s15, %s685_s15   ;;  %s495_s14 = sphi %s528_s14, %s684_s14   ;;  %s491_s13 = sphi %s526_s13, %s683_s13   ;;  %s487_s12 = sphi %s524_s12, %s682_s12  }
   0x6   : > { %s549_s18 = sadd.s32 1, %s499_s15   ;;  %s93_s19 = sadd.s32 1, %s495_s14 }
   0x7   : > { %s90_s20 = ssub.s32 %s499_s15, %s549_s18  ;;  %p103_p0 = scmp.ne.s32.totalorder %s495_s14, %s491_s13 }
   0x8   : > { %p91_p1 = scmp.eq.s32.totalorder %s90_s20, 0  ;;  %p104_p2 = scmp.eq.s32.totalorder %s545_s16, 2 }
   0x9   : > { %p109_p3 = scmp.ne.s32.totalorder %s491_s13, %s487_s12  ;;  %p110_p4 = scmp.eq.s32.totalorder %s323_s17, 2 }
   0xa   : > { %s560_s21 = scalar_select %p91_p1, %s495_s14, %s93_s19  }
   0xb   : > { %p562_p5 = por %p104_p2, %p103_p0  ;;  %p566_p6 = por %p110_p4, %p109_p3 }
   0xc   : > { %p324_p7 = scmp.ge.s32.totalorder %s499_s15, 1  ;;  %p117_p8 = scmp.lt.s32.totalorder %s499_s15, 4 }
   0xd   : > { %s674_s23 = scalar_select %p566_p6, 1, 0 }
   0xe   : > { %p572_p9 = pnand %p324_p7, %p117_p8  ;;  %p672_p10 = scmp.eq.s32.totalorder %s545_s16, 0 }
   0xf   : > { %s139_s27 = sshll.u32 %s669_s1, 4  ;;  %s401_s4 = scalar_lea.hbm %s668_s0, 32  ;;  %s140_s27 = int_to_ptr.vmem [resolvable:$true] %s139_s27 }
  0x10   : > { %p351_p11 = pneg %p572_p9  ;;  %p402_p13 = scmp.ne.s32.totalorder %s668_s0, %s401_s4 }
  0x11   : > { %p408_p3 = scmp.lt.u32.totalorder %s401_s4, %s668_s0 }
  0x12   : > { %p584_p12 = pnand %p672_p10, %p351_p11 }
  0x14   : > { %p403_p0 = pneg %p584_p12 }
  0x16   : > { %p404_p1 = pnand %p403_p0, %p402_p13 }
  0x18   : > { %p405_p2 = pneg %p404_p1 }
  0x1a   : > { %p410_p4 = pnand %p408_p3, %p405_p2 }
  0x1c   : > { %413 = shalt.err (!%p410_p4)
}
  0x1d   : > { %s501_s9 = smov [#allocation2]   ;;  %s414_s17 = scalar_lea.vmem %s140_s27, 16 }
  0x1e   : > { %354 = dma.hbm_to_smem (!%p584_p12), %s668_s0, 32, %s501_s9, [#allocation4]  }
  0x1f   : > { %p415_p7 = scmp.ne.s32.totalorder %s140_s27, %s414_s17  ;;  %p422_p10 = scmp.lt.s32.totalorder %s140_s27, %s140_s27 }
  0x20   : > { %p423_p13 = scmp.lt.s32.totalorder %s414_s17, %s414_s17 }
  0x21   : > { %p417_p8 = pnand %p415_p7, %p403_p0 }
  0x22   : > { %p424_p1 = por %p423_p13, %p422_p10 }
  0x23   : > { %p418_p11 = pneg %p417_p8 }
  0x25   : > { %p425_p6 = pnand %p424_p1, %p418_p11 }
  0x27   : > { %428 = shalt.err (!%p425_p6)
}
  0x28   : > { %s502_s19 = smov [#allocation6]   ;;  %159 = sbr.rel (%p572_p9) target bundleno = 93 (0x5d), region = 32 }
  0x29   : > { %357 = dma.vmem_to_smem (!%p584_p12), %s140_s27, 16, %s502_s19, [#allocation5]  }
  0x2a   : > { %p677_p2 = scmp.eq.s32.totalorder (!%p572_p9), %s545_s16, 0 }
  0x2f   : > { %474 = dma.done.wait (%p677_p2), [#allocation4], 32   ;;  %p678_p3 = pmov %p677_p2 }
  0x30   : > { %p679_p0 = pmov %p677_p2 }
  0x31   : > { %476 = vsyncadd (%p678_p3), [#allocation4], 4294967264 }
  0x32   : > { %478 = dma.done.wait (%p679_p0), [#allocation5], 16   ;;  %p680_p10 = pmov %p679_p0 }
  0x34   : > { %480 = vsyncadd (%p680_p10), [#allocation5], 4294967280 }
  0x35   : > { %169 = sfence }
  0x36   : > { %p187_p6 = scmp.lt.s32.totalorder %s545_s16, 2  ;;  %s192_s20 = sld [smem:[#allocation2]]  ;;  %vm221_vm0 = vcmask 1040384  }
  0x37   : > { %s333_s25 = sld [smem:[#allocation2 + $0x80]]  ;;  %s334_s26 = sld [smem:[#allocation2 + $0x1]] }
  0x38   : > { %s188_s24 = scalar_select %p187_p6, %s545_s16, 2 }
  0x39   : > { %s335_s28 = sld [smem:[#allocation2 + $0x81]]  ;;  %s202_s5 = sld [smem:[#allocation6]] }
  0x3a   : > { %s332_s27 = sshll.u32 %s188_s24, 1  ;;  %s336_s6 = sld [smem:[#allocation6 + $0x1]] }
  0x3b   : > { %s190_s4 = scalar_lea.vmem %s670_s2, %s332_s27  ;;  %s184_s7 = sand.u32 1, %s491_s13  }
  0x3c   : > { %v193_v0 = vstv %s192_s20  ;;  %v191_v1 = vld [vmem:[%s190_s4] sm:$0x3]  ;;  %s331_s8 = sshll.u32 %s184_s7, 1  ;;  %s338_s11 = sshll.u32 %s545_s16, 5 }
  0x3d   : > { %v196_v2 = vstv %s333_s25  ;;  %v194_v4 = vmul.f32 %v193_v0, %v191_v1  ;;  %v206_v5 = vstv %s334_s26  ;;  %s186_s9 = scalar_lea.vmem [#allocation7], %s331_s8  ;;  %s628_s20 = scalar_lea.hbm %s671_s3, %s338_s11 }
  0x3e   : > { %v197_v3 = vmul.f32 %v196_v2, %v191_v1  ;;  %v207_v8 = vmul.f32 %v206_v5, %v191_v1  ;;  %s240_s10 = sshll.u32 %s186_s9, 4  ;;  %s227_s25 = scalar_lea.sflag [#allocation3], %s184_s7  ;;  %s623_s10 = int_to_ptr.vmem [resolvable:$true] %s240_s10 }
  0x3f   : > { %v209_v7 = vstv %s335_s28  ;;  %v203_v12 = vstv %s202_s5  ;;  %s429_s24 = scalar_lea.vmem %s623_s10, 32  ;;  %s503_s16 = smov [#allocation7]  }
  0x40   : > { %v199_v6 = vrot.slane %v197_v3, 1  ;;  %v210_v9 = vmul.f32 %v209_v7, %v191_v1  ;;  %v216_v13 = vstv %s336_s6  ;;  %p430_p9 = scmp.ne.s32.totalorder %s623_s10, %s429_s24  ;;  %s433_s26 = sshll.u32 %s503_s16, 4  ;;  %s434_s26 = int_to_ptr.vmem [resolvable:$false] %s433_s26 }
  0x41   : > { %s435_s27 = scalar_lea.vmem %s434_s26, 64  ;;  %p436_p7 = scmp.lt.s32.totalorder %s623_s10, %s434_s26 }
  0x42   : > { %v201_v10 = vadd.f32 %v199_v6, %v194_v4  ;;  %v212_v11 = vrot.slane %v210_v9, 1  ;;  %p431_p12 = pnand %p430_p9, %p562_p5  ;;  %p437_p8 = scmp.lt.s32.totalorder %s435_s27, %s429_s24 }
  0x44   : > { %v214_v14 = vadd.f32 %v212_v11, %v207_v8  ;;  %v204_v15 = vadd.f32 %v203_v12, %v201_v10  ;;  %p432_p4 = pneg %p431_p12  ;;  %p438_p11 = por %p437_p8, %p436_p7 }
  0x46   : > { %v217_v16 = vadd.f32 %v216_v13, %v214_v14  ;;  %p439_p13 = pnand %p438_p11, %p432_p4 }
  0x48   : > { %v219_v17 = vrot.slane %v217_v16, 7 }
  0x4a   : > { %v222_v18 = vsel %vm221_vm0, %v204_v15, %v219_v17 }
  0x4b   : > { %v223_v19 = vmul.f32 0.01, %v222_v18 }
  0x4d   : > { %v224_v20 = vmax.f32 %v222_v18, %v223_v19 }
  0x4f   : > { %225 = vst [vmem:[%s186_s9] sm:$0x3] %v224_v20 }
  0x50   : > { %442 = shalt.err (!%p439_p13)
}
  0x51   : > { %s443_s28 = scalar_lea.hbm %s628_s20, 32  ;;  %s447_s4 = scalar_lea.hbm %s671_s3, 96 }
  0x52   : > { %p444_p1 = scmp.ne.s32.totalorder %s628_s20, %s443_s28  ;;  %p448_p0 = scmp.lt.u32.totalorder %s628_s20, %s671_s3 }
  0x53   : > { %p449_p10 = scmp.lt.u32.totalorder %s447_s4, %s443_s28  ;;  %p451_p9 = scmp.lt.u32.totalorder %s443_s28, %s628_s20 }
  0x54   : > { %p445_p2 = pnand %p444_p1, %p562_p5 }
  0x55   : > { %p450_p6 = por %p449_p10, %p448_p0 }
  0x56   : > { %p446_p3 = pneg %p445_p2 }
  0x57   : > { %p452_p12 = por %p451_p9, %p450_p6 }
  0x59   : > { %p453_p4 = pnand %p452_p12, %p446_p3 }
  0x5b   : > { %456 = shalt.err (!%p453_p4)
}
  0x5c   : > { %349 = dma.vmem_to_hbm [thread:$0]  (%p562_p5), %s623_s10, 32, %s628_s20, %s227_s25  }
  0x5d PF: > { %p366_p7 = scmp.ge.s32.totalorder %s499_s15, 2  ;;  %s252_s7 = sand.u32 1, %s487_s12  }
  0x5e   : > { %p681_p8 = scmp.ne.s32.totalorder %s674_s23, 0  ;;  %s253_s8 = scalar_lea.sflag [#allocation3], %s252_s7 }
  0x60   : > { %p359_p11 = pnand %p366_p7, %p681_p8 }
  0x62   : > { %482 = dma.done.wait (!%p359_p11), %s253_s8, 32  }
  0x63   : > { %484 = vsyncadd (!%p359_p11), %s253_s8, 4294967264  ;;  %p15_p13 = scmp.ge.s32.totalorder %s549_s18, 5   ;;  %s682_s12 = smov %s491_s13 }
  0x64   : > { %s683_s13 = smov %s495_s14  ;;  %s684_s14 = smov %s560_s21 }
  0x65   : > { %s685_s15 = smov %s549_s18  ;;  %17 = sbr.rel (!%p15_p13) target bundleno = 5 (0x5), region = 77 }
  0x6c   :  { %258 = vsyncpa [#allocation3], 1 }
  0x6d   :  { %260 = vsyncpa [#allocation3 + $0x1], 1 }
  0x6e   :  { %261 = vsyncpa [#allocation4], 1 }
  0x6f   :  { %263 = vsyncpa [#allocation4 + $0x1], 1 }
  0x70   :  { %264 = vsyncpa [#allocation5], 1 }
  0x71   :  { %266 = vsyncpa [#allocation5 + $0x1], 1 }

</bundles_post_ra>
